<compile_context>
chip_gen: v6e
topology: v6e:2x2x1
jax: 0.10.0
libtpu: 0.0.40
codegen_flags: <defaults>
</compile_context>

<pallas_src>
import functools
import math

import jax
import jax.numpy as jnp
from jax.experimental import pallas as pl
from jax.experimental.pallas import tpu as pltpu

CONTEXT_SIZE = 64
_NEG_INF = -1e30          # large finite negative; exp() underflows to exactly 0


# --------------------------------------------------------------------------
# Kernel
# --------------------------------------------------------------------------
def _single_head_kernel(x_ref, w_ref, b_ref, mask_ref, o_ref,
                        *, batch_tile, seq_len, d_out, flat_out):
    # x_ref   : (batch_tile*T, Din)  -- token rows, already flattened
    # w_ref   : (Din, 3*Dout)        -- [Wk | Wq | Wv], resident in VMEM
    # b_ref   : (1, 3*Dout)          -- [bk | bq | bv]
    # mask_ref: (T, T)               -- additive causal mask (0 / -1e30)
    x = x_ref[...]

    # Fused QKV projection: single (bt*T, Din) @ (Din, 3*Dout) MXU matmul,
    # bf16 operands, f32 accumulation.
    qkv = jnp.dot(x.astype(jnp.bfloat16),
                  w_ref[...].astype(jnp.bfloat16),
                  preferred_element_type=jnp.float32) + b_ref[...]

    # Slice k / q / v and restore the (bt, T, Dout) batch structure
    # (leading-dim split only; last dim unchanged -> no lane relayout).
    k = qkv[:, 0 * d_out:1 * d_out].reshape(batch_tile, seq_len, d_out)
    q = qkv[:, 1 * d_out:2 * d_out].reshape(batch_tile, seq_len, d_out)
    v = qkv[:, 2 * d_out:3 * d_out].reshape(batch_tile, seq_len, d_out)

    # Fold the 1/sqrt(Dout) scale into q (cheaper than scaling the TxT scores).
    q = q * (float(d_out) ** -0.5)

    q_bf = q.astype(jnp.bfloat16)
    k_bf = k.astype(jnp.bfloat16)
    v_bf = v.astype(jnp.bfloat16)

    # scores = (q @ k^T) * scale  + additive causal mask        (bt, T, T) f32
    s = jnp.einsum('bqe,bke->bqk', q_bf, k_bf,
                   preferred_element_type=jnp.float32)
    s = s + mask_ref[...][None, :, :]

    # Numerically-stable softmax along the key axis; divide goes to the EUP.
    m = jnp.max(s, axis=-1, keepdims=True)
    p = jnp.exp(s - m)
    denom = jnp.sum(p, axis=-1, keepdims=True)
    attn = p * pl.reciprocal(denom, approx=True)

    out = jnp.einsum('bqk,bke->bqe', attn.astype(jnp.bfloat16), v_bf,
                     preferred_element_type=jnp.float32)

    if flat_out:
        # Lane-dense store: (bt, T*Dout) with T*Dout a multiple of 128.
        o_ref[...] = out.reshape(batch_tile, seq_len * d_out).astype(o_ref.dtype)
    else:
        o_ref[...] = out.astype(o_ref.dtype)


# --------------------------------------------------------------------------
# Wrapper
# --------------------------------------------------------------------------
def _choose_batch_tile(B, T, d_in, d_out, vmem_budget_bytes=12 * 1024 * 1024):
    """Largest multiple-of-8 divisor of B whose working set fits the VMEM
    budget, preferring >= 2 grid steps (so v7x can use both TensorCores).
    Falls back to the whole batch (single grid step, always-legal blocks)."""
    bytes_per_seq = (
        2 * T * d_in * 4          # x tile, double-buffered
        + 2 * T * d_out * 4       # output tile, double-buffered
        + T * 3 * d_out * 4       # fused qkv activations (f32)
        + 2 * T * T * 2           # bf16 score / prob copies
        + 2 * T * T * 4)          # f32 scores + exp intermediate
    cap = max(1, vmem_budget_bytes // bytes_per_seq)
    upper = min(cap, max(B // 2, 1))
    for t in range(upper, 0, -1):
        if B % t == 0 and t % 8 == 0:
            return t
    return B


def pack_params(params):
    """Pack the three nn.Linear layers into one fused weight/bias.
    Do this once, outside the hot path."""
    w = jnp.concatenate([params["wk"], params["wq"], params["wv"]], axis=1)
    b = jnp.concatenate([params["bk"], params["bq"], params["bv"]], axis=1)
    return w, b


def _build_call(B, T, d_in, d_out, dtype, batch_tile, flat_out):
    grid = (B // batch_tile,)

    def resident(shape):
        return pl.BlockSpec(shape, lambda i: (0,) * len(shape))

    in_specs = [
        pl.BlockSpec((batch_tile * T, d_in), lambda i: (i, 0)),   # x (flat rows)
        resident((d_in, 3 * d_out)),                              # fused W
        resident((1, 3 * d_out)),                                 # fused b
        resident((T, T)),                                         # causal mask
    ]
    if flat_out:
        out_shape = jax.ShapeDtypeStruct((B, T * d_out), dtype)
        out_specs = pl.BlockSpec((batch_tile, T * d_out), lambda i: (i, 0))
    else:
        out_shape = jax.ShapeDtypeStruct((B, T, d_out), dtype)
        out_specs = pl.BlockSpec((batch_tile, T, d_out), lambda i: (i, 0, 0))

    kernel = functools.partial(_single_head_kernel, batch_tile=batch_tile,
                               seq_len=T, d_out=d_out, flat_out=flat_out)
    return pl.pallas_call(
        kernel,
        out_shape=out_shape,
        grid=grid,
        in_specs=in_specs,
        out_specs=out_specs,
        compiler_params=pltpu.CompilerParams(
            dimension_semantics=("parallel",)),   # batch tiles are independent
    )


def single_head_forward(x, w_qkv, b_qkv, *, batch_tile=None):
    """x: (B, T, Din) float32 with T <= CONTEXT_SIZE and T % 8 == 0.
    w_qkv: (Din, 3*Dout) = [Wk | Wq | Wv];  b_qkv: (1, 3*Dout)."""
    B, T, d_in = x.shape
    assert T <= CONTEXT_SIZE, "sequence length exceeds context_size"
    assert T % 8 == 0, "kernel requires seq length to be a multiple of 8"
    d_out = w_qkv.shape[1] // 3

    if batch_tile is None:
        batch_tile = _choose_batch_tile(B, T, d_in, d_out)
    assert B % batch_tile == 0

    x_rows = x.reshape(B * T, d_in)                       # free metadata reshape
    mask = jnp.where(jnp.tril(jnp.ones((T, T), dtype=bool)),
                     0.0, _NEG_INF).astype(jnp.float32)

    try:
        # Preferred path: lane-dense (B, T*Dout) output.
        call = _build_call(B, T, d_in, d_out, x.dtype, batch_tile, flat_out=True)
        out = call(x_rows, w_qkv, b_qkv, mask)
        out = jax.block_until_ready(out)                  # surface any failure here
        return out.reshape(B, T, d_out)
    except Exception:
        # Some Mosaic versions reject the minor-dim-merging reshape needed for
        # the flat store; fall back to the 3-D (B, T, Dout) output layout.
        call = _build_call(B, T, d_in, d_out, x.dtype, batch_tile, flat_out=False)
        return call(x_rows, w_qkv, b_qkv, mask)


# --------------------------------------------------------------------------
# Params / reference / demo
# --------------------------------------------------------------------------
def init_params(key, in_dim, out_dim):
    """nn.Linear-style init (uniform +/- 1/sqrt(fan_in)); weights stored
    transposed relative to PyTorch, i.e. (in_features, out_features)."""
    ks = jax.random.split(key, 6)

    def linear(kw, kb):
        bound = 1.0 / math.sqrt(in_dim)
        w = jax.random.uniform(kw, (in_dim, out_dim), jnp.float32, -bound, bound)
        b = jax.random.uniform(kb, (1, out_dim), jnp.float32, -bound, bound)
        return w, b

    wk, bk = linear(ks[0], ks[1])
    wq, bq = linear(ks[2], ks[3])
    wv, bv = linear(ks[4], ks[5])
    return {"wk": wk, "bk": bk, "wq": wq, "bq": bq, "wv": wv, "bv": bv}


def _reference(x, p):
    """Pure-JAX f32 reference matching the PyTorch forward."""
    k = x @ p["wk"] + p["bk"]
    q = x @ p["wq"] + p["bq"]
    v = x @ p["wv"] + p["bv"]
    s = jnp.einsum('bqe,bke->bqk', q, k) * (k.shape[-1] ** -0.5)
    t = x.shape[1]
    mask = jnp.tril(jnp.ones((t, t), dtype=bool))
    s = jnp.where(mask[None], s, -jnp.inf)
    attn = jax.nn.softmax(s, axis=-1)
    return attn @ v


if __name__ == "__main__":
    key = jax.random.PRNGKey(0)
    kp, kx = jax.random.split(key)

    batch, seq, in_dim, out_dim = 2, 8, 32, 16
    params = init_params(kp, in_dim, out_dim)
    w_qkv, b_qkv = pack_params(params)          # fused QKV params, packed once
    x = jax.random.normal(kx, (batch, seq, in_dim), jnp.float32)

    y = single_head_forward(x, w_qkv, b_qkv)
    y = jax.block_until_ready(y)
    assert y.shape == (batch, seq, out_dim)

    ref = _reference(x, params)
    # bf16 MXU operands (f32 accumulation) -> small drift vs the f32 reference.
    assert jnp.allclose(y, ref, atol=3e-2, rtol=3e-2), "mismatch vs reference"

    print("KERNEL_OK")
</pallas_src>

<mosaic_0001>
module attributes {stable_mosaic.version = 11 : i64} {
  func.func @_single_head_kernel(%arg0: i32, %arg1: memref<16x32xf32, #tpu.memory_space<vmem>>, %arg2: memref<32x48xf32, #tpu.memory_space<vmem>>, %arg3: memref<1x48xf32, #tpu.memory_space<vmem>>, %arg4: memref<8x8xf32, #tpu.memory_space<vmem>>, %arg5: memref<2x128xf32, #tpu.memory_space<vmem>>) attributes {dimension_semantics = [#tpu.dimension_semantics<parallel>], iteration_bounds = array<i64: 1>, scalar_prefetch = 0 : i64, scratch_operands = 0 : i64, tpu.core_type = #tpu.core_type<tc>, window_params = [{transform_indices = @transform_0, window_bounds = array<i64: 16, 32>}, {pipeline_mode = #tpu.pipeline_mode<synchronous>, transform_indices = @transform_1, window_bounds = array<i64: 32, 48>}, {pipeline_mode = #tpu.pipeline_mode<synchronous>, transform_indices = @transform_2, window_bounds = array<i64: 1, 48>}, {pipeline_mode = #tpu.pipeline_mode<synchronous>, transform_indices = @transform_3, window_bounds = array<i64: 8, 8>}, {transform_indices = @transform_4, window_bounds = array<i64: 2, 128>}]} {
    %c0 = arith.constant 0 : index
    %c0_0 = arith.constant 0 : index
    %0 = vector.load %arg1[%c0, %c0_0] : memref<16x32xf32, #tpu.memory_space<vmem>>, vector<16x32xf32>
    %1 = arith.truncf %0 : vector<16x32xf32> to vector<16x32xbf16>
    %c0_1 = arith.constant 0 : index
    %c0_2 = arith.constant 0 : index
    %2 = vector.load %arg2[%c0_1, %c0_2] : memref<32x48xf32, #tpu.memory_space<vmem>>, vector<32x48xf32>
    %3 = arith.truncf %2 : vector<32x48xf32> to vector<32x48xbf16>
    %cst = arith.constant dense<0.000000e+00> : vector<16x48xf32>
    %4 = tpu.matmul %1, %3, %cst {dimension_numbers = #tpu.dot_dimension_numbers<[1], [0], [0], [1], [0, 0, 1, 1], [], []>} : vector<16x32xbf16>, vector<32x48xbf16>, vector<16x48xf32> -> vector<16x48xf32>
    %c0_3 = arith.constant 0 : index
    %c0_4 = arith.constant 0 : index
    %5 = vector.load %arg3[%c0_3, %c0_4] : memref<1x48xf32, #tpu.memory_space<vmem>>, vector<1x48xf32>
    %6 = vector.broadcast %5 : vector<1x48xf32> to vector<16x48xf32>
    %7 = arith.addf %4, %6 : vector<16x48xf32>
    %8 = vector.extract_strided_slice %7 {offsets = [0, 0], sizes = [16, 16], strides = [1, 1]} : vector<16x48xf32> to vector<16x16xf32>
    %9 = vector.shape_cast %8 : vector<16x16xf32> to vector<2x8x16xf32>
    %10 = vector.extract_strided_slice %7 {offsets = [0, 16], sizes = [16, 16], strides = [1, 1]} : vector<16x48xf32> to vector<16x16xf32>
    %11 = vector.shape_cast %10 : vector<16x16xf32> to vector<2x8x16xf32>
    %12 = vector.extract_strided_slice %7 {offsets = [0, 32], sizes = [16, 16], strides = [1, 1]} : vector<16x48xf32> to vector<16x16xf32>
    %13 = vector.shape_cast %12 : vector<16x16xf32> to vector<2x8x16xf32>
    %cst_5 = arith.constant 2.500000e-01 : f32
    %14 = vector.broadcast %cst_5 : f32 to vector<2x8x16xf32>
    %15 = arith.mulf %11, %14 : vector<2x8x16xf32>
    %16 = arith.truncf %15 : vector<2x8x16xf32> to vector<2x8x16xbf16>
    %17 = arith.truncf %9 : vector<2x8x16xf32> to vector<2x8x16xbf16>
    %18 = arith.truncf %13 : vector<2x8x16xf32> to vector<2x8x16xbf16>
    "tpu.trace_start"() <{level = 10 : i32, message = "bqe,bke->bqk"}> : () -> ()
    %cst_6 = arith.constant dense<0.000000e+00> : vector<2x8x8xf32>
    %19 = tpu.matmul %16, %17, %cst_6 {dimension_numbers = #tpu.dot_dimension_numbers<[2], [2], [1], [1], [0, 0, 0, 1, 1, 1], [0], [0]>} : vector<2x8x16xbf16>, vector<2x8x16xbf16>, vector<2x8x8xf32> -> vector<2x8x8xf32>
    "tpu.trace_stop"() : () -> ()
    %c0_7 = arith.constant 0 : index
    %c0_8 = arith.constant 0 : index
    %20 = vector.load %arg4[%c0_7, %c0_8] : memref<8x8xf32, #tpu.memory_space<vmem>>, vector<8x8xf32>
    %21 = vector.shape_cast %20 : vector<8x8xf32> to vector<1x8x8xf32>
    %22 = vector.broadcast %21 : vector<1x8x8xf32> to vector<2x8x8xf32>
    %23 = arith.addf %19, %22 : vector<2x8x8xf32>
    %cst_9 = arith.constant dense<0xFF800000> : vector<2x8xf32>
    %24 = vector.multi_reduction <maximumf>, %23, %cst_9 [2] : vector<2x8x8xf32> to vector<2x8xf32>
    %25 = vector.shape_cast %24 : vector<2x8xf32> to vector<2x8x1xf32>
    %26 = vector.broadcast %25 : vector<2x8x1xf32> to vector<2x8x8xf32>
    %27 = arith.subf %23, %26 : vector<2x8x8xf32>
    %28 = math.exp %27 : vector<2x8x8xf32>
    %cst_10 = arith.constant dense<0.000000e+00> : vector<2x8xf32>
    %29 = vector.multi_reduction <add>, %28, %cst_10 [2] : vector<2x8x8xf32> to vector<2x8xf32>
    %30 = vector.shape_cast %29 : vector<2x8xf32> to vector<2x8x1xf32>
    %31 = tpu.reciprocal %30 {approx = true} : vector<2x8x1xf32> -> vector<2x8x1xf32>
    %32 = vector.broadcast %31 : vector<2x8x1xf32> to vector<2x8x8xf32>
    %33 = arith.mulf %28, %32 : vector<2x8x8xf32>
    %34 = arith.truncf %33 : vector<2x8x8xf32> to vector<2x8x8xbf16>
    "tpu.trace_start"() <{level = 10 : i32, message = "bqk,bke->bqe"}> : () -> ()
    %cst_11 = arith.constant dense<0.000000e+00> : vector<2x8x16xf32>
    %35 = tpu.matmul %34, %18, %cst_11 {dimension_numbers = #tpu.dot_dimension_numbers<[2], [1], [1], [2], [0, 0, 0, 1, 1, 2], [0], [0]>} : vector<2x8x8xbf16>, vector<2x8x16xbf16>, vector<2x8x16xf32> -> vector<2x8x16xf32>
    "tpu.trace_stop"() : () -> ()
    %36 = vector.shape_cast %35 : vector<2x8x16xf32> to vector<2x128xf32>
    %c0_12 = arith.constant 0 : index
    %c0_13 = arith.constant 0 : index
    %37 = vector.load %arg5[%c0_12, %c0_13] : memref<2x128xf32, #tpu.memory_space<vmem>>, vector<2x128xf32>
    tpu.vector_store %arg5[%c0_12, %c0_13], %36 {strides = array<i32>} : memref<2x128xf32, #tpu.memory_space<vmem>>, vector<2x128xf32>,
    return
  }
  func.func @transform_0(%arg0: i32) -> (i32, i32) {
    %c0_i32 = arith.constant 0 : i32
    %c0_i32_0 = arith.constant 0 : i32
    return %arg0, %c0_i32 : i32, i32
  }
  func.func @transform_1(%arg0: i32) -> (i32, i32) {
    %c0_i32 = arith.constant 0 : i32
    %c0_i32_0 = arith.constant 0 : i32
    %c0_i32_1 = arith.constant 0 : i32
    return %c0_i32, %c0_i32_0 : i32, i32
  }
  func.func @transform_2(%arg0: i32) -> (i32, i32) {
    %c0_i32 = arith.constant 0 : i32
    %c0_i32_0 = arith.constant 0 : i32
    %c0_i32_1 = arith.constant 0 : i32
    return %c0_i32, %c0_i32_0 : i32, i32
  }
  func.func @transform_3(%arg0: i32) -> (i32, i32) {
    %c0_i32 = arith.constant 0 : i32
    %c0_i32_0 = arith.constant 0 : i32
    %c0_i32_1 = arith.constant 0 : i32
    return %c0_i32, %c0_i32_0 : i32, i32
  }
  func.func @transform_4(%arg0: i32) -> (i32, i32) {
    %c0_i32 = arith.constant 0 : i32
    %c0_i32_0 = arith.constant 0 : i32
    return %arg0, %c0_i32 : i32, i32
  }
}

module attributes {stable_mosaic.version = 11 : i64} {
  func.func @_single_head_kernel(%arg0: i32, %arg1: memref<16x32xf32, #tpu.memory_space<vmem>>, %arg2: memref<32x48xf32, #tpu.memory_space<vmem>>, %arg3: memref<1x48xf32, #tpu.memory_space<vmem>>, %arg4: memref<8x8xf32, #tpu.memory_space<vmem>>, %arg5: memref<2x8x16xf32, #tpu.memory_space<vmem>>) attributes {dimension_semantics = [#tpu.dimension_semantics<parallel>], iteration_bounds = array<i64: 1>, scalar_prefetch = 0 : i64, scratch_operands = 0 : i64, tpu.core_type = #tpu.core_type<tc>, window_params = [{transform_indices = @transform_0, window_bounds = array<i64: 16, 32>}, {pipeline_mode = #tpu.pipeline_mode<synchronous>, transform_indices = @transform_1, window_bounds = array<i64: 32, 48>}, {pipeline_mode = #tpu.pipeline_mode<synchronous>, transform_indices = @transform_2, window_bounds = array<i64: 1, 48>}, {pipeline_mode = #tpu.pipeline_mode<synchronous>, transform_indices = @transform_3, window_bounds = array<i64: 8, 8>}, {transform_indices = @transform_4, window_bounds = array<i64: 2, 8, 16>}]} {
    %c0 = arith.constant 0 : index
    %c0_0 = arith.constant 0 : index
    %0 = vector.load %arg1[%c0, %c0_0] : memref<16x32xf32, #tpu.memory_space<vmem>>, vector<16x32xf32>
    %1 = arith.truncf %0 : vector<16x32xf32> to vector<16x32xbf16>
    %c0_1 = arith.constant 0 : index
    %c0_2 = arith.constant 0 : index
    %2 = vector.load %arg2[%c0_1, %c0_2] : memref<32x48xf32, #tpu.memory_space<vmem>>, vector<32x48xf32>
    %3 = arith.truncf %2 : vector<32x48xf32> to vector<32x48xbf16>
    %cst = arith.constant dense<0.000000e+00> : vector<16x48xf32>
    %4 = tpu.matmul %1, %3, %cst {dimension_numbers = #tpu.dot_dimension_numbers<[1], [0], [0], [1], [0, 0, 1, 1], [], []>} : vector<16x32xbf16>, vector<32x48xbf16>, vector<16x48xf32> -> vector<16x48xf32>
    %c0_3 = arith.constant 0 : index
    %c0_4 = arith.constant 0 : index
    %5 = vector.load %arg3[%c0_3, %c0_4] : memref<1x48xf32, #tpu.memory_space<vmem>>, vector<1x48xf32>
    %6 = vector.broadcast %5 : vector<1x48xf32> to vector<16x48xf32>
    %7 = arith.addf %4, %6 : vector<16x48xf32>
    %8 = vector.extract_strided_slice %7 {offsets = [0, 0], sizes = [16, 16], strides = [1, 1]} : vector<16x48xf32> to vector<16x16xf32>
    %9 = vector.shape_cast %8 : vector<16x16xf32> to vector<2x8x16xf32>
    %10 = vector.extract_strided_slice %7 {offsets = [0, 16], sizes = [16, 16], strides = [1, 1]} : vector<16x48xf32> to vector<16x16xf32>
    %11 = vector.shape_cast %10 : vector<16x16xf32> to vector<2x8x16xf32>
    %12 = vector.extract_strided_slice %7 {offsets = [0, 32], sizes = [16, 16], strides = [1, 1]} : vector<16x48xf32> to vector<16x16xf32>
    %13 = vector.shape_cast %12 : vector<16x16xf32> to vector<2x8x16xf32>
    %cst_5 = arith.constant 2.500000e-01 : f32
    %14 = vector.broadcast %cst_5 : f32 to vector<2x8x16xf32>
    %15 = arith.mulf %11, %14 : vector<2x8x16xf32>
    %16 = arith.truncf %15 : vector<2x8x16xf32> to vector<2x8x16xbf16>
    %17 = arith.truncf %9 : vector<2x8x16xf32> to vector<2x8x16xbf16>
    %18 = arith.truncf %13 : vector<2x8x16xf32> to vector<2x8x16xbf16>
    "tpu.trace_start"() <{level = 10 : i32, message = "bqe,bke->bqk"}> : () -> ()
    %cst_6 = arith.constant dense<0.000000e+00> : vector<2x8x8xf32>
    %19 = tpu.matmul %16, %17, %cst_6 {dimension_numbers = #tpu.dot_dimension_numbers<[2], [2], [1], [1], [0, 0, 0, 1, 1, 1], [0], [0]>} : vector<2x8x16xbf16>, vector<2x8x16xbf16>, vector<2x8x8xf32> -> vector<2x8x8xf32>
    "tpu.trace_stop"() : () -> ()
    %c0_7 = arith.constant 0 : index
    %c0_8 = arith.constant 0 : index
    %20 = vector.load %arg4[%c0_7, %c0_8] : memref<8x8xf32, #tpu.memory_space<vmem>>, vector<8x8xf32>
    %21 = vector.shape_cast %20 : vector<8x8xf32> to vector<1x8x8xf32>
    %22 = vector.broadcast %21 : vector<1x8x8xf32> to vector<2x8x8xf32>
    %23 = arith.addf %19, %22 : vector<2x8x8xf32>
    %cst_9 = arith.constant dense<0xFF800000> : vector<2x8xf32>
    %24 = vector.multi_reduction <maximumf>, %23, %cst_9 [2] : vector<2x8x8xf32> to vector<2x8xf32>
    %25 = vector.shape_cast %24 : vector<2x8xf32> to vector<2x8x1xf32>
    %26 = vector.broadcast %25 : vector<2x8x1xf32> to vector<2x8x8xf32>
    %27 = arith.subf %23, %26 : vector<2x8x8xf32>
    %28 = math.exp %27 : vector<2x8x8xf32>
    %cst_10 = arith.constant dense<0.000000e+00> : vector<2x8xf32>
    %29 = vector.multi_reduction <add>, %28, %cst_10 [2] : vector<2x8x8xf32> to vector<2x8xf32>
    %30 = vector.shape_cast %29 : vector<2x8xf32> to vector<2x8x1xf32>
    %31 = tpu.reciprocal %30 {approx = true} : vector<2x8x1xf32> -> vector<2x8x1xf32>
    %32 = vector.broadcast %31 : vector<2x8x1xf32> to vector<2x8x8xf32>
    %33 = arith.mulf %28, %32 : vector<2x8x8xf32>
    %34 = arith.truncf %33 : vector<2x8x8xf32> to vector<2x8x8xbf16>
    "tpu.trace_start"() <{level = 10 : i32, message = "bqk,bke->bqe"}> : () -> ()
    %cst_11 = arith.constant dense<0.000000e+00> : vector<2x8x16xf32>
    %35 = tpu.matmul %34, %18, %cst_11 {dimension_numbers = #tpu.dot_dimension_numbers<[2], [1], [1], [2], [0, 0, 0, 1, 1, 2], [0], [0]>} : vector<2x8x8xbf16>, vector<2x8x16xbf16>, vector<2x8x16xf32> -> vector<2x8x16xf32>
    "tpu.trace_stop"() : () -> ()
    %c0_12 = arith.constant 0 : index
    %c0_13 = arith.constant 0 : index
    %c0_14 = arith.constant 0 : index
    %36 = vector.load %arg5[%c0_12, %c0_13, %c0_14] : memref<2x8x16xf32, #tpu.memory_space<vmem>>, vector<2x8x16xf32>
    tpu.vector_store %arg5[%c0_12, %c0_13, %c0_14], %35 {strides = array<i32>} : memref<2x8x16xf32, #tpu.memory_space<vmem>>, vector<2x8x16xf32>,
    return
  }
  func.func @transform_0(%arg0: i32) -> (i32, i32) {
    %c0_i32 = arith.constant 0 : i32
    %c0_i32_0 = arith.constant 0 : i32
    return %arg0, %c0_i32 : i32, i32
  }
  func.func @transform_1(%arg0: i32) -> (i32, i32) {
    %c0_i32 = arith.constant 0 : i32
    %c0_i32_0 = arith.constant 0 : i32
    %c0_i32_1 = arith.constant 0 : i32
    return %c0_i32, %c0_i32_0 : i32, i32
  }
  func.func @transform_2(%arg0: i32) -> (i32, i32) {
    %c0_i32 = arith.constant 0 : i32
    %c0_i32_0 = arith.constant 0 : i32
    %c0_i32_1 = arith.constant 0 : i32
    return %c0_i32, %c0_i32_0 : i32, i32
  }
  func.func @transform_3(%arg0: i32) -> (i32, i32) {
    %c0_i32 = arith.constant 0 : i32
    %c0_i32_0 = arith.constant 0 : i32
    %c0_i32_1 = arith.constant 0 : i32
    return %c0_i32, %c0_i32_0 : i32, i32
  }
  func.func @transform_4(%arg0: i32) -> (i32, i32, i32) {
    %c0_i32 = arith.constant 0 : i32
    %c0_i32_0 = arith.constant 0 : i32
    %c0_i32_1 = arith.constant 0 : i32
    return %arg0, %c0_i32, %c0_i32_0 : i32, i32, i32
  }
}

</mosaic_0001>

<bundles_post_ra>
// kernel: tpu_custom_call.1
= control target key start
LH: loop header
LB: loop body
LE: loop exit
PB: predicated region body
PF: predicated region fallthrough
CT: control target
= control target key end

     0   :  { %9 = vsyncpa [#allocation3], 0  ;;  %s732_s0 = inlined_call_operand.hbm [shape: f32[16,32], index: 0, kind: input, shape index: {}]   ;;  %s733_s1 = inlined_call_operand.hbm [shape: f32[32,48], index: 1, kind: input, shape index: {}]   ;;  %s734_s2 = inlined_call_operand.vmem [shape: f32[1,48], index: 2, kind: input, shape index: {}]   ;;  %s735_s3 = inlined_call_operand.hbm [shape: f32[8,8], index: 3, kind: input, shape index: {}]   ;;  %s736_s4 = inlined_call_operand.hbm [shape: f32[2,128], index: 4, kind: output, shape index: {}]  }
   0x1   :  { %10 = vsyncpa [#allocation6], 0 }
   0x2   :  { %11 = vsyncpa [#allocation4], 0  ;;  %s632_s15 = smov [#allocation5]   ;;  %s633_s17 = smov [#allocation2]  }
   0x3   :  { %s29_s16 = sshll.u32 %s632_s15, 4  ;;  %s17_s18 = sshll.u32 %s633_s17, 4  ;;  %s30_s16 = int_to_ptr.vmem [resolvable:$true] %s29_s16  ;;  %s18_s18 = int_to_ptr.vmem [resolvable:$true] %s17_s18 }
   0x4   :  { %s554_s19 = scalar_lea.vmem %s30_s16, 512  ;;  %p559_p1 = scmp.lt.s32.totalorder %s30_s16, %s30_s16 }
   0x5   :  { %p555_p0 = scmp.ne.s32.totalorder %s30_s16, %s554_s19  ;;  %p560_p2 = scmp.lt.s32.totalorder %s554_s19, %s554_s19 }
   0x7   :  { %p561_p3 = por %p560_p2, %p559_p1 }
   0x9   :  { %p562_p4 = pnand %p561_p3, %p555_p0 }
   0xb   :  { %565 = shalt.err (!%p562_p4)
}
   0xc   :  { %s634_s20 = smov 128   ;;  %s635_s21 = smov 8  }
   0xd   :  { %35 = dma.hbm_to_vmem [thread:$0]  %s733_s1, 512, %s30_s16, [#allocation6], %s634_s20, %s634_s20, %s635_s21  }
   0xe   :  { %s574_s24 = scalar_lea.vmem %s18_s18, 256  ;;  %p579_p6 = scmp.lt.s32.totalorder %s18_s18, %s18_s18 }
   0xf   :  { %p575_p5 = scmp.ne.s32.totalorder %s18_s18, %s574_s24  ;;  %p580_p7 = scmp.lt.s32.totalorder %s574_s24, %s574_s24 }
  0x11   :  { %p581_p8 = por %p580_p7, %p579_p6 }
  0x13   :  { %p582_p9 = pnand %p581_p8, %p575_p5 }
  0x15   :  { %585 = shalt.err (!%p582_p9)
}
  0x16   :  { %23 = dma.hbm_to_vmem [thread:$0]  %s732_s0, 256, %s18_s18, [#allocation3], %s634_s20, %s634_s20, %s635_s21  }
  0x17   :  { %s636_s27 = smov [#allocation7]  }
  0x18   :  { %s44_s28 = sshll.u32 %s636_s27, 4  ;;  %s45_s28 = int_to_ptr.vmem [resolvable:$true] %s44_s28 }
  0x19   :  { %s594_s29 = scalar_lea.vmem %s45_s28, 128  ;;  %p599_p11 = scmp.lt.s32.totalorder %s45_s28, %s45_s28 }
  0x1a   :  { %p595_p10 = scmp.ne.s32.totalorder %s45_s28, %s594_s29  ;;  %p600_p12 = scmp.lt.s32.totalorder %s594_s29, %s594_s29 }
  0x1c   :  { %p601_p13 = por %p600_p12, %p599_p11 }
  0x1e   :  { %p602_p0 = pnand %p601_p13, %p595_p10 }
  0x20   :  { %605 = shalt.err (!%p602_p0)
}
  0x21   :  { %47 = dma.hbm_to_vmem [thread:$0]  %s735_s3, 128, %s45_s28, [#allocation6]  }
  0x22   :  { %626 = dma.done.wait [#allocation3], 256  }
  0x23   :  { %627 = vsyncadd [#allocation3], 4294967040 }
  0x24   :  { %628 = dma.done.wait [#allocation6], 640  }
  0x25   :  { %629 = vsyncadd [#allocation6], 4294966656  ;;  %v637_v0 = vmov 0.0   ;;  %vm638_vm0 = vmmov 0   ;;  %v63_v1 = vld [vmem:[#allocation5 + $0x10] sm:$0xff]  ;;  %v64_v2 = vld [vmem:[#allocation5 + $0x18] sm:$0xff] }
  0x26   :  { %489 = vmatprep.subr.bf16.mxu0 %v637_v0  ;;  %493 = vmatprep.mubr.msk.bf16.mxu0 %vm638_vm0, %v637_v0  ;;  %v61_v3 = vld [vmem:[#allocation5] sm:$0xff]  ;;  %v66_v4 = vpack.c.bf16 %v64_v2, %v63_v1  ;;  %v62_v5 = vld [vmem:[#allocation5 + $0x8] sm:$0xff]  ;;  %v58_v7 = vld [vmem:[#allocation2] sm:$0xff]  ;;  %vm74_vm1 = vcmask 261120   ;;  %vm129_vm2 = vcmask 130048   ;;  %s639_s5 = smov 112   ;;  %v353_v1 = vlaneseq }
  0x27   :  { %497 = vmatprep.subr.bf16.mxu1 %v637_v0  ;;  %499 = vmatprep.mubr.msk.bf16.mxu1 %vm638_vm0, %v637_v0  ;;  %v65_v6 = vpack.c.bf16 %v62_v5, %v61_v3  ;;  %v59_v8 = vld [vmem:[#allocation2 + $0x8] sm:$0xff]  ;;  %v472_v10 = vld [vmem:[%s734_s2] ss:$0 sm:$0xff]  ;;  %v125_v27 = vld [vmem:[#allocation7] sm:$0xff]  ;;  %vm225_vm3 = vcmask 64512   ;;  %s640_s2 = smov 96  }
  0x28   :  { %490 = vmatpush3.bf16.msra.mxu0 %v66_v4  ;;  %v60_v9 = vpack.c.bf16 %v59_v8, %v58_v7  ;;  %vm256_vm4 = vcmask 1043456   ;;  %v641_v62 = vmov 1983009808   ;;  %v354_v3 = vshrl.u32 %v353_v1, 7  ;;  %s643_s6 = smov 32   ;;  %s644_s7 = smov 48  }
  0x29   :  { %491 = vmatprep.subr.bf16.mxu0 %v637_v0  ;;  %v351_v63 = vunpack.c.l.s4 %v641_v62  ;;  %v642_v4 = vmov 1934713408   ;;  %s645_s8 = smov 16   ;;  %s646_s9 = smov 64   ;;  %vm445_vm5 = vcmask 392192   ;;  %vm447_vm6 = vcmask 523264  }
  0x2a   :  { %v382_v5 = vunpack.c.l.s4 %v642_v4  ;;  %s647_s10 = smov 80   ;;  %vm449_vm7 = vcmask 654336   ;;  %vm451_vm8 = vcmask 785408   ;;  %s648_s11 = smov [#allocation8]   ;;  %vm453_vm9 = vcmask 916480  }
  0x2b   :  { %v352_v2 = vunpack.c.0.s8 %v351_v63  ;;  %s462_s12 = sshll.u32 %s648_s11, 4  ;;  %s463_s12 = int_to_ptr.vmem [resolvable:$true] %s462_s12 }
  0x2c   :  { %492 = vmatpush3.bf16.msra.mxu0 %v65_v6  ;;  %v383_v8 = vunpack.c.0.s8 %v382_v5  ;;  %s606_s13 = scalar_lea.vmem %s463_s12, 32  ;;  %p611_p2 = scmp.lt.s32.totalorder %s463_s12, %s463_s12 }
  0x2d   :  { %503 = vmatprep.subr.bf16.mxu0 %v637_v0  ;;  %v355_v7 = vsub.s32 %v352_v2, %v354_v3  ;;  %p607_p1 = scmp.ne.s32.totalorder %s463_s12, %s606_s13  ;;  %p612_p3 = scmp.lt.s32.totalorder %s606_s13, %s606_s13 }
  0x2f   :  { %494 = vmatmul.mubr.msk.bf16.vlgmr.msra.gmra.mxu0 %vm74_vm1, %v60_v9  ;;  %p613_p4 = por %p612_p3, %p611_p2 }
  0x30   :  { %505 = vmatprep.mubr.msk.bf16.mxu0 %vm638_vm0, %v637_v0 }
  0x31   :  { %p614_p5 = pnand %p613_p4, %p607_p1 }
  0xef   :  { %v112_v11 = vpop.f32.mrf.mxu0 }
  0xf0   :  { %v113_v12 = vadd.f32 %v472_v10, %v112_v11 }
  0xf1   :  { %v495_v13 = vpop.f32.mrf.mxu0 }
  0xf2   :  { %v123_v14 = vpack.c.bf16 %v113_v12, %v113_v12  ;;  %v119_v15 = vmul.f32 0.25, %v113_v12 }
  0xf3   :  { %v115_v16 = vpop.f32.mrf.mxu0 }
  0xf4   :  { %v116_v17 = vadd.f32 %v472_v10, %v115_v16  ;;  %v134_v18 = vsel %vm129_vm2, %v123_v14, 0  ;;  %v121_v19 = vpack.c.bf16 %v119_v15, %v119_v15  ;;  %v386_v15 = vsub.s32 %v383_v8, %v354_v3 }
  0xf5   :  { %v496_v20 = vpop.f32.mrf.mxu0  ;;  %498 = vmatpush3.bf16.xpose.msra.mxu1 %v134_v18 }
  0xf6   :  { %v120_v21 = vmul.f32 0.25, %v116_v17  ;;  %v124_v22 = vpack.c.bf16 %v116_v17, %v116_v17  ;;  %127 = vrot.lane.b32.xlu0 %v121_v19, %s639_s5  ;;  %509 = vmatprep.subr.bf16.mxu1 %v637_v0 }
  0xf8   :  { %v122_v23 = vpack.c.bf16 %v120_v21, %v120_v21  ;;  %v183_v24 = vsel %vm129_vm2, %v124_v22, 0 }
  0xf9   :  { %504 = vmatpush3.bf16.xpose.msra.mxu0 %v183_v24 }
  0xfa   :  { %177 = vrot.lane.b32.xlu0 %v122_v23, %s639_s5  ;;  %515 = vmatprep.subr.bf16.mxu0 %v637_v0 }
 0x168   :  { %v128_v25 = vpop.permute.xlu0 %127 }
 0x169   :  { %500 = vmatmul.mubr.msk.bf16.vlgmr.msra.gmra.mxu1 %vm129_vm2, %v128_v25 }
 0x16a   :  { %511 = vmatprep.mubr.msk.bf16.mxu1 %vm638_vm0, %v637_v0 }
 0x16c   :  { %v178_v26 = vpop.permute.xlu0 %177 }
 0x16d   :  { %506 = vmatmul.mubr.msk.bf16.vlgmr.msra.gmra.mxu0 %vm129_vm2, %v178_v26 }
 0x16e   :  { %517 = vmatprep.mubr.msk.bf16.mxu0 %vm638_vm0, %v637_v0 }
 0x229   :  { %v170_v28 = vpop.f32.mrf.mxu1 }
 0x22a   :  { %v171_v29 = vadd.f32 %v170_v28, %v125_v27 }
 0x22b   :  { %v501_v30 = vpop.f32.mrf.mxu1 }
 0x22c   :  { %v226_v31 = vsel %vm225_vm3, %v171_v29, -inf }
 0x22d   :  { %227 = vmax.xlane.f32.xlu1 %v226_v31  ;;  %v173_v32 = vpop.f32.mrf.mxu1  ;;  %v219_v33 = vpop.f32.mrf.mxu0 }
 0x22e   :  { %v220_v34 = vadd.f32 %v219_v33, %v125_v27 }
 0x22f   :  { %v502_v35 = vpop.f32.mrf.mxu1  ;;  %v507_v36 = vpop.f32.mrf.mxu0 }
 0x230   :  { %v229_v37 = vsel %vm225_vm3, %v220_v34, -inf }
 0x231   :  { %230 = vmax.xlane.f32.xlu1 %v229_v37  ;;  %v222_v38 = vpop.f32.mrf.mxu0 }
 0x233   :  { %v508_v39 = vpop.f32.mrf.mxu0 }
 0x242   :  { %251 = vrot.lane.b32.xlu1 %v123_v14, %s640_s2 }
 0x2b6   :  { %v228_v40 = vpop.xlane.xlu1 %227 }
 0x2b7   :  { %v232_v41 = vsub.f32 %v171_v29, %v228_v40 }
 0x2b9   :  { %v234_v42 = vmul.f32 1.442695, %v232_v41 }
 0x2ba   :  { %v231_v43 = vpop.xlane.xlu1 %230 }
 0x2bb   :  { %538 = vpow2.f32 %v234_v42  ;;  %v233_v44 = vsub.f32 %v220_v34, %v231_v43 }
 0x2bd   :  { %v236_v45 = vmul.f32 1.442695, %v233_v44 }
 0x2be   :  { %v252_v46 = vpop.permute.xlu1 %251 }
 0x2bf   :  { %540 = vpow2.f32 %v236_v45  ;;  %v258_v47 = vsel %vm256_vm4, %v252_v46, 0 }
 0x2c0   :  { %510 = vmatpush3.bf16.msra.mxu1 %v258_v47 }
 0x2c8   :  { %v539_v48 = vpop.eup %538 }
 0x2c9   :  { %v238_v49 = vsel %vm225_vm3, %v539_v48, 0.0 }
 0x2ca   :  { %239 = vadd.xlane.f32.xlu0 %v238_v49 }
 0x2cc   :  { %v541_v50 = vpop.eup %540 }
 0x2cd   :  { %v241_v51 = vsel %vm225_vm3, %v541_v50, 0.0 }
 0x2ce   :  { %242 = vadd.xlane.f32.xlu1 %v241_v51 }
 0x2df   :  { %301 = vrot.lane.b32.xlu1 %v124_v22, %s640_s2 }
 0x353   :  { %v240_v52 = vpop.xlane.xlu0 %239 }
 0x354   :  { %542 = vrcp.f32 %v240_v52 }
 0x357   :  { %v243_v53 = vpop.xlane.xlu1 %242 }
 0x358   :  { %544 = vrcp.f32 %v243_v53 }
 0x35b   :  { %v302_v54 = vpop.permute.xlu1 %301 }
 0x35c   :  { %v307_v55 = vsel %vm256_vm4, %v302_v54, 0 }
 0x35d   :  { %516 = vmatpush3.bf16.msra.mxu0 %v307_v55 }
 0x361   :  { %v543_v56 = vpop.eup %542 }
 0x362   :  { %v246_v57 = vmul.f32 %v543_v56, %v539_v48 }
 0x364   :  { %v248_v58 = vpack.c.bf16 %v246_v57, %v246_v57 }
 0x365   :  { %v545_v59 = vpop.eup %544 }
 0x366   :  { %512 = vmatmul.mubr.msk.bf16.vlgmr.msra.gmra.mxu1 %vm225_vm3, %v248_v58  ;;  %v247_v60 = vmul.f32 %v545_v59, %v541_v50 }
 0x368   :  { %v249_v61 = vpack.c.bf16 %v247_v60, %v247_v60 }
 0x36a   :  { %518 = vmatmul.mubr.msk.bf16.vlgmr.msra.gmra.mxu0 %vm225_vm3, %v249_v61 }
 0x426   :  { %v294_v6 = vpop.f32.mrf.mxu1 }
 0x427   :  { %v356_v12 = vrot.slane %v294_v6, %v355_v7  ;;  %v349_v18 = vcombine.high %v294_v6, %v637_v0 }
 0x428   :  { %v513_v9 = vpop.f32.mrf.mxu1 }
 0x429   :  { %v363_v26 = vrot.slane %v349_v18, %v355_v7 }
 0x42a   :  { %v297_v10 = vpop.f32.mrf.mxu1  ;;  %v343_v11 = vpop.f32.mrf.mxu0 }
 0x42b   :  { %v364_v13 = vcombine.high %v343_v11, %v637_v0  ;;  %v371_v14 = vrot.slane %v343_v11, %v355_v7 }
 0x42c   :  { %v514_v16 = vpop.f32.mrf.mxu1  ;;  %v519_v17 = vpop.f32.mrf.mxu0 }
 0x42d   :  { %v379_v19 = vcombine.low %v356_v12, %v371_v14  ;;  %v380_v20 = vcombine.high %v356_v12, %v371_v14  ;;  %v378_v22 = vrot.slane %v364_v13, %v355_v7 }
 0x42e   :  { %v346_v21 = vpop.f32.mrf.mxu0 }
 0x42f   :  { %v387_v23 = vrot.slane %v379_v19, %v386_v15  ;;  %v394_v24 = vrot.slane %v380_v20, %v386_v15  ;;  %v395_v28 = vcombine.low %v363_v26, %v378_v22  ;;  %v396_v30 = vcombine.high %v363_v26, %v378_v22 }
 0x430   :  { %v520_v25 = vpop.f32.mrf.mxu0 }
 0x431   :  { %420 = vrot.lane.b32.xlu1 %v394_v24, %s643_s6  ;;  %v412_v27 = vcombine.high %v394_v24, %v637_v0  ;;  %v411_v29 = vcombine.high %v387_v23, %v637_v0  ;;  %v403_v31 = vrot.slane %v395_v28, %v386_v15  ;;  %v410_v32 = vrot.slane %v396_v30, %v386_v15 }
 0x433   :  { %424 = vrot.lane.b32.xlu0 %v412_v27, %s644_s7  ;;  %v413_v33 = vcombine.high %v403_v31, %v637_v0  ;;  %v414_v34 = vcombine.high %v410_v32, %v637_v0 }
 0x435   :  { %416 = vrot.lane.b32.xlu1 %v411_v29, %s645_s8 }
 0x439   :  { %428 = vrot.lane.b32.xlu1 %v403_v31, %s646_s9 }
 0x43d   :  { %436 = vrot.lane.b32.xlu1 %v410_v32, %s640_s2 }
 0x441   :  { %432 = vrot.lane.b32.xlu1 %v413_v33, %s647_s10 }
 0x445   :  { %440 = vrot.lane.b32.xlu1 %v414_v34, %s639_s5 }
 0x4a3   :  { %v421_v35 = vpop.permute.xlu1 %420 }
 0x4a5   :  { %v425_v40 = vpop.permute.xlu0 %424 }
 0x4a7   :  { %v417_v36 = vpop.permute.xlu1 %416 }
 0x4a8   :  { %v443_v37 = vsel %vm129_vm2, %v387_v23, %v417_v36 }
 0x4a9   :  { %v444_v39 = vsel %vm74_vm1, %v443_v37, %v421_v35 }
 0x4aa   :  { %v446_v42 = vsel %vm445_vm5, %v444_v39, %v425_v40 }
 0x4ab   :  { %v429_v38 = vpop.permute.xlu1 %428 }
 0x4ac   :  { %v448_v43 = vsel %vm447_vm6, %v446_v42, %v429_v38 }
 0x4af   :  { %v437_v41 = vpop.permute.xlu1 %436 }
 0x4b3   :  { %v433_v44 = vpop.permute.xlu1 %432 }
 0x4b4   :  { %v450_v45 = vsel %vm449_vm7, %v448_v43, %v433_v44 }
 0x4b5   :  { %v452_v0 = vsel %vm451_vm8, %v450_v45, %v437_v41 }
 0x4b7   :  { %v441_v46 = vpop.permute.xlu1 %440 }
 0x4b8   :  { %v454_v47 = vsel %vm453_vm9, %v452_v0, %v441_v46 }
 0x4b9   :  { %455 = vst [vmem:[#allocation8] sm:$0x3] %v454_v47 }
 0x4ba   :  { %617 = shalt.err (!%p614_p5)
}
 0x4bb   :  { %465 = dma.vmem_to_hbm [thread:$0]  %s463_s12, 32, %s736_s4, [#allocation4]  }
 0x4bc   :  { %630 = dma.done.wait [#allocation4], 32  }
 0x4bd   :  { %631 = vsyncadd [#allocation4], 4294967264 }
 0x4be   :  { %469 = vsyncpa [#allocation3], 1 }
 0x4bf   :  { %470 = vsyncpa [#allocation6], 1 }
 0x4c0   :  { %471 = vsyncpa [#allocation4], 1 }

// kernel: tpu_custom_call.1
= control target key start
LH: loop header
LB: loop body
LE: loop exit
PB: predicated region body
PF: predicated region fallthrough
CT: control target
= control target key end

     0   :  { %9 = vsyncpa [#allocation3], 0  ;;  %s600_s0 = inlined_call_operand.hbm [shape: f32[16,32], index: 0, kind: input, shape index: {}]   ;;  %s601_s1 = inlined_call_operand.hbm [shape: f32[32,48], index: 1, kind: input, shape index: {}]   ;;  %s602_s2 = inlined_call_operand.vmem [shape: f32[1,48], index: 2, kind: input, shape index: {}]   ;;  %s603_s3 = inlined_call_operand.hbm [shape: f32[8,8], index: 3, kind: input, shape index: {}]   ;;  %s604_s4 = inlined_call_operand.hbm [shape: f32[2,8,16], index: 4, kind: output, shape index: {}]  }
   0x1   :  { %10 = vsyncpa [#allocation6], 0 }
   0x2   :  { %11 = vsyncpa [#allocation4], 0  ;;  %s522_s15 = smov [#allocation5]   ;;  %s523_s17 = smov [#allocation2]  }
   0x3   :  { %s29_s16 = sshll.u32 %s522_s15, 4  ;;  %s17_s18 = sshll.u32 %s523_s17, 4  ;;  %s30_s16 = int_to_ptr.vmem [resolvable:$true] %s29_s16  ;;  %s18_s18 = int_to_ptr.vmem [resolvable:$true] %s17_s18 }
   0x4   :  { %s444_s19 = scalar_lea.vmem %s30_s16, 512  ;;  %p449_p1 = scmp.lt.s32.totalorder %s30_s16, %s30_s16 }
   0x5   :  { %p445_p0 = scmp.ne.s32.totalorder %s30_s16, %s444_s19  ;;  %p450_p2 = scmp.lt.s32.totalorder %s444_s19, %s444_s19 }
   0x7   :  { %p451_p3 = por %p450_p2, %p449_p1 }
   0x9   :  { %p452_p4 = pnand %p451_p3, %p445_p0 }
   0xb   :  { %455 = shalt.err (!%p452_p4)
}
   0xc   :  { %s524_s20 = smov 128   ;;  %s525_s21 = smov 8  }
   0xd   :  { %35 = dma.hbm_to_vmem [thread:$0]  %s601_s1, 512, %s30_s16, [#allocation6], %s524_s20, %s524_s20, %s525_s21  }
   0xe   :  { %s464_s24 = scalar_lea.vmem %s18_s18, 256  ;;  %p469_p6 = scmp.lt.s32.totalorder %s18_s18, %s18_s18 }
   0xf   :  { %p465_p5 = scmp.ne.s32.totalorder %s18_s18, %s464_s24  ;;  %p470_p7 = scmp.lt.s32.totalorder %s464_s24, %s464_s24 }
  0x11   :  { %p471_p8 = por %p470_p7, %p469_p6 }
  0x13   :  { %p472_p9 = pnand %p471_p8, %p465_p5 }
  0x15   :  { %475 = shalt.err (!%p472_p9)
}
  0x16   :  { %23 = dma.hbm_to_vmem [thread:$0]  %s600_s0, 256, %s18_s18, [#allocation3], %s524_s20, %s524_s20, %s525_s21  }
  0x17   :  { %s526_s27 = smov [#allocation7]  }
  0x18   :  { %s44_s28 = sshll.u32 %s526_s27, 4  ;;  %s45_s28 = int_to_ptr.vmem [resolvable:$true] %s44_s28 }
  0x19   :  { %s484_s29 = scalar_lea.vmem %s45_s28, 128  ;;  %p489_p11 = scmp.lt.s32.totalorder %s45_s28, %s45_s28 }
  0x1a   :  { %p485_p10 = scmp.ne.s32.totalorder %s45_s28, %s484_s29  ;;  %p490_p12 = scmp.lt.s32.totalorder %s484_s29, %s484_s29 }
  0x1c   :  { %p491_p13 = por %p490_p12, %p489_p11 }
  0x1e   :  { %p492_p0 = pnand %p491_p13, %p485_p10 }
  0x20   :  { %495 = shalt.err (!%p492_p0)
}
  0x21   :  { %47 = dma.hbm_to_vmem [thread:$0]  %s603_s3, 128, %s45_s28, [#allocation6]  }
  0x22   :  { %516 = dma.done.wait [#allocation3], 256  }
  0x23   :  { %517 = vsyncadd [#allocation3], 4294967040 }
  0x24   :  { %518 = dma.done.wait [#allocation6], 640  }
  0x25   :  { %519 = vsyncadd [#allocation6], 4294966656  ;;  %v527_v0 = vmov 0.0   ;;  %vm528_vm0 = vmmov 0   ;;  %v63_v1 = vld [vmem:[#allocation5 + $0x10] sm:$0xff]  ;;  %v64_v2 = vld [vmem:[#allocation5 + $0x18] sm:$0xff] }
  0x26   :  { %386 = vmatprep.subr.bf16.mxu0 %v527_v0  ;;  %390 = vmatprep.mubr.msk.bf16.mxu0 %vm528_vm0, %v527_v0  ;;  %v61_v3 = vld [vmem:[#allocation5] sm:$0xff]  ;;  %v66_v4 = vpack.c.bf16 %v64_v2, %v63_v1  ;;  %v62_v5 = vld [vmem:[#allocation5 + $0x8] sm:$0xff]  ;;  %v58_v7 = vld [vmem:[#allocation2] sm:$0xff]  ;;  %vm74_vm1 = vcmask 261120   ;;  %vm129_vm2 = vcmask 130048   ;;  %s529_s5 = smov 112  }
  0x27   :  { %394 = vmatprep.subr.bf16.mxu1 %v527_v0  ;;  %396 = vmatprep.mubr.msk.bf16.mxu1 %vm528_vm0, %v527_v0  ;;  %v65_v6 = vpack.c.bf16 %v62_v5, %v61_v3  ;;  %v59_v8 = vld [vmem:[#allocation2 + $0x8] sm:$0xff]  ;;  %v369_v10 = vld [vmem:[%s602_s2] ss:$0 sm:$0xff]  ;;  %v125_v27 = vld [vmem:[#allocation7] sm:$0xff]  ;;  %vm225_vm3 = vcmask 64512   ;;  %s530_s2 = smov 96  }
  0x28   :  { %387 = vmatpush3.bf16.msra.mxu0 %v66_v4  ;;  %v60_v9 = vpack.c.bf16 %v59_v8, %v58_v7  ;;  %vm256_vm4 = vcmask 1043456   ;;  %s531_s6 = smov [#allocation8]  }
  0x29   :  { %388 = vmatprep.subr.bf16.mxu0 %v527_v0  ;;  %s356_s7 = sshll.u32 %s531_s6, 4  ;;  %s357_s7 = int_to_ptr.vmem [resolvable:$true] %s356_s7 }
  0x2a   :  { %s496_s8 = scalar_lea.vmem %s357_s7, 256  ;;  %p501_p2 = scmp.lt.s32.totalorder %s357_s7, %s357_s7 }
  0x2b   :  { %p497_p1 = scmp.ne.s32.totalorder %s357_s7, %s496_s8  ;;  %p502_p3 = scmp.lt.s32.totalorder %s496_s8, %s496_s8 }
  0x2c   :  { %389 = vmatpush3.bf16.msra.mxu0 %v65_v6 }
  0x2d   :  { %400 = vmatprep.subr.bf16.mxu0 %v527_v0  ;;  %p503_p4 = por %p502_p3, %p501_p2 }
  0x2f   :  { %391 = vmatmul.mubr.msk.bf16.vlgmr.msra.gmra.mxu0 %vm74_vm1, %v60_v9  ;;  %p504_p5 = pnand %p503_p4, %p497_p1 }
  0x30   :  { %402 = vmatprep.mubr.msk.bf16.mxu0 %vm528_vm0, %v527_v0 }
  0xef   :  { %v112_v11 = vpop.f32.mrf.mxu0 }
  0xf0   :  { %v113_v12 = vadd.f32 %v369_v10, %v112_v11 }
  0xf1   :  { %v392_v13 = vpop.f32.mrf.mxu0 }
  0xf2   :  { %v123_v14 = vpack.c.bf16 %v113_v12, %v113_v12  ;;  %v119_v15 = vmul.f32 0.25, %v113_v12 }
  0xf3   :  { %v115_v16 = vpop.f32.mrf.mxu0 }
  0xf4   :  { %v116_v17 = vadd.f32 %v369_v10, %v115_v16  ;;  %v134_v18 = vsel %vm129_vm2, %v123_v14, 0  ;;  %v121_v19 = vpack.c.bf16 %v119_v15, %v119_v15 }
  0xf5   :  { %v393_v20 = vpop.f32.mrf.mxu0  ;;  %395 = vmatpush3.bf16.xpose.msra.mxu1 %v134_v18 }
  0xf6   :  { %v120_v21 = vmul.f32 0.25, %v116_v17  ;;  %v124_v22 = vpack.c.bf16 %v116_v17, %v116_v17  ;;  %127 = vrot.lane.b32.xlu0 %v121_v19, %s529_s5  ;;  %406 = vmatprep.subr.bf16.mxu1 %v527_v0 }
  0xf8   :  { %v122_v23 = vpack.c.bf16 %v120_v21, %v120_v21  ;;  %v183_v24 = vsel %vm129_vm2, %v124_v22, 0 }
  0xf9   :  { %401 = vmatpush3.bf16.xpose.msra.mxu0 %v183_v24 }
  0xfa   :  { %177 = vrot.lane.b32.xlu0 %v122_v23, %s529_s5  ;;  %412 = vmatprep.subr.bf16.mxu0 %v527_v0 }
 0x168   :  { %v128_v25 = vpop.permute.xlu0 %127 }
 0x169   :  { %397 = vmatmul.mubr.msk.bf16.vlgmr.msra.gmra.mxu1 %vm129_vm2, %v128_v25 }
 0x16a   :  { %408 = vmatprep.mubr.msk.bf16.mxu1 %vm528_vm0, %v527_v0 }
 0x16c   :  { %v178_v26 = vpop.permute.xlu0 %177 }
 0x16d   :  { %403 = vmatmul.mubr.msk.bf16.vlgmr.msra.gmra.mxu0 %vm129_vm2, %v178_v26 }
 0x16e   :  { %414 = vmatprep.mubr.msk.bf16.mxu0 %vm528_vm0, %v527_v0 }
 0x229   :  { %v170_v28 = vpop.f32.mrf.mxu1 }
 0x22a   :  { %v171_v29 = vadd.f32 %v170_v28, %v125_v27 }
 0x22b   :  { %v398_v30 = vpop.f32.mrf.mxu1 }
 0x22c   :  { %v226_v31 = vsel %vm225_vm3, %v171_v29, -inf }
 0x22d   :  { %227 = vmax.xlane.f32.xlu1 %v226_v31  ;;  %v173_v32 = vpop.f32.mrf.mxu1  ;;  %v219_v33 = vpop.f32.mrf.mxu0 }
 0x22e   :  { %v220_v34 = vadd.f32 %v219_v33, %v125_v27 }
 0x22f   :  { %v399_v35 = vpop.f32.mrf.mxu1  ;;  %v404_v36 = vpop.f32.mrf.mxu0 }
 0x230   :  { %v229_v37 = vsel %vm225_vm3, %v220_v34, -inf }
 0x231   :  { %230 = vmax.xlane.f32.xlu1 %v229_v37  ;;  %v222_v38 = vpop.f32.mrf.mxu0 }
 0x233   :  { %v405_v39 = vpop.f32.mrf.mxu0 }
 0x242   :  { %251 = vrot.lane.b32.xlu1 %v123_v14, %s530_s2 }
 0x2b6   :  { %v228_v40 = vpop.xlane.xlu1 %227 }
 0x2b7   :  { %v232_v41 = vsub.f32 %v171_v29, %v228_v40 }
 0x2b9   :  { %v234_v42 = vmul.f32 1.442695, %v232_v41 }
 0x2ba   :  { %v231_v43 = vpop.xlane.xlu1 %230 }
 0x2bb   :  { %428 = vpow2.f32 %v234_v42  ;;  %v233_v44 = vsub.f32 %v220_v34, %v231_v43 }
 0x2bd   :  { %v236_v45 = vmul.f32 1.442695, %v233_v44 }
 0x2be   :  { %v252_v46 = vpop.permute.xlu1 %251 }
 0x2bf   :  { %430 = vpow2.f32 %v236_v45  ;;  %v258_v47 = vsel %vm256_vm4, %v252_v46, 0 }
 0x2c0   :  { %407 = vmatpush3.bf16.msra.mxu1 %v258_v47 }
 0x2c8   :  { %v429_v48 = vpop.eup %428 }
 0x2c9   :  { %v238_v49 = vsel %vm225_vm3, %v429_v48, 0.0 }
 0x2ca   :  { %239 = vadd.xlane.f32.xlu0 %v238_v49 }
 0x2cc   :  { %v431_v50 = vpop.eup %430 }
 0x2cd   :  { %v241_v51 = vsel %vm225_vm3, %v431_v50, 0.0 }
 0x2ce   :  { %242 = vadd.xlane.f32.xlu1 %v241_v51 }
 0x2df   :  { %301 = vrot.lane.b32.xlu1 %v124_v22, %s530_s2 }
 0x353   :  { %v240_v52 = vpop.xlane.xlu0 %239 }
 0x354   :  { %432 = vrcp.f32 %v240_v52 }
 0x357   :  { %v243_v53 = vpop.xlane.xlu1 %242 }
 0x358   :  { %434 = vrcp.f32 %v243_v53 }
 0x35b   :  { %v302_v54 = vpop.permute.xlu1 %301 }
 0x35c   :  { %v307_v55 = vsel %vm256_vm4, %v302_v54, 0 }
 0x35d   :  { %413 = vmatpush3.bf16.msra.mxu0 %v307_v55 }
 0x361   :  { %v433_v56 = vpop.eup %432 }
 0x362   :  { %v246_v57 = vmul.f32 %v433_v56, %v429_v48 }
 0x364   :  { %v248_v58 = vpack.c.bf16 %v246_v57, %v246_v57 }
 0x365   :  { %v435_v59 = vpop.eup %434 }
 0x366   :  { %409 = vmatmul.mubr.msk.bf16.vlgmr.msra.gmra.mxu1 %vm225_vm3, %v248_v58  ;;  %v247_v60 = vmul.f32 %v435_v59, %v431_v50 }
 0x368   :  { %v249_v61 = vpack.c.bf16 %v247_v60, %v247_v60 }
 0x36a   :  { %415 = vmatmul.mubr.msk.bf16.vlgmr.msra.gmra.mxu0 %vm225_vm3, %v249_v61 }
 0x426   :  { %v294_v62 = vpop.f32.mrf.mxu1 }
 0x427   :  { %349 = vst.msk [vmem:[#allocation8] sm:$0xff] %vm129_vm2, %v294_v62 }
 0x428   :  { %v410_v63 = vpop.f32.mrf.mxu1 }
 0x42a   :  { %v297_v0 = vpop.f32.mrf.mxu1  ;;  %v343_v1 = vpop.f32.mrf.mxu0 }
 0x42b   :  { %350 = vst.msk [vmem:[#allocation8 + $0x8] sm:$0xff] %vm129_vm2, %v343_v1 }
 0x42c   :  { %v411_v2 = vpop.f32.mrf.mxu1  ;;  %v416_v3 = vpop.f32.mrf.mxu0 }
 0x42d   :  { %507 = shalt.err (!%p504_p5)
}
 0x42e   :  { %362 = dma.vmem_to_hbm [thread:$0]  %s357_s7, 256, %s604_s4, [#allocation4], %s524_s20, %s524_s20, %s525_s21   ;;  %v346_v4 = vpop.f32.mrf.mxu0 }
 0x430   :  { %v417_v5 = vpop.f32.mrf.mxu0 }
 0x431   :  { %520 = dma.done.wait [#allocation4], 256  }
 0x432   :  { %521 = vsyncadd [#allocation4], 4294967040 }
 0x433   :  { %366 = vsyncpa [#allocation3], 1 }
 0x434   :  { %367 = vsyncpa [#allocation6], 1 }
 0x435   :  { %368 = vsyncpa [#allocation4], 1 }

</bundles_post_ra>
